<compile_context>
chip_gen: v5e
topology: v5e:2x2
jax: 0.10.0
libtpu: 0.0.40
codegen_flags: <defaults>
</compile_context>

<pallas_src>
import functools
import math

import jax
import jax.numpy as jnp
from jax.experimental import pallas as pl
from jax.experimental.pallas import tpu as pltpu


# ---------------------------------------------------------------------------
# Kernels
# ---------------------------------------------------------------------------

def _rmsnorm_kernel(x_ref, w_ref, o_ref, *, eps: float):
    """Standard path: one logical row per block row, normalize over lanes."""
    x = x_ref[...].astype(jnp.float32)                 # [tile_rows, dim]
    w = w_ref[...].astype(jnp.float32)                 # [1, dim]
    ms = jnp.mean(x * x, axis=-1, keepdims=True)       # [tile_rows, 1]
    inv = jax.lax.rsqrt(ms + eps)
    o_ref[...] = (x * inv * w).astype(o_ref.dtype)


def _rmsnorm_packed_kernel(x_ref, w_ref, seg_ref, o_ref, *,
                           inv_dim: float, eps: float):
    """Lane-packed path: `pack` logical rows share the 128-lane axis.

    seg_ref is a (L, L) block-diagonal ones matrix (L = pack * dim).  A single
    MXU matmul computes the per-segment sum of squares AND broadcasts it back
    across each dim-lane segment, avoiding cross-lane reshapes/shuffles.
    """
    x = x_ref[...].astype(jnp.float32)                 # [tile_rows, L]
    w = w_ref[...].astype(jnp.float32)                 # [1, L]
    seg = seg_ref[...]                                 # [L, L] f32 (0/1)
    ms = jnp.dot(x * x, seg,
                 preferred_element_type=jnp.float32) * inv_dim   # [tile_rows, L]
    inv = jax.lax.rsqrt(ms + eps)
    o_ref[...] = (x * inv * w).astype(o_ref.dtype)


# ---------------------------------------------------------------------------
# Wrapper
# ---------------------------------------------------------------------------

def _choose_tile_rows(rows: int, lane_dim: int, itemsize: int) -> int:
    """Largest row tile that fits the per-generation VMEM budget."""
    # Sublane packing multiples: f32 -> 8, bf16 -> 16, int8/fp8 -> 32.
    sub = {4: 8, 2: 16, 1: 32}.get(itemsize, 8)
    if rows <= sub:
        return rows  # tiny input: one full-array block (block dim == array dim)

    # Budget ~8 MiB per block buffer => ~32 MiB live for double-buffered
    # (input + output) blocks.  Fits v7x's 64 MiB physical VMEM and is well
    # under v5e/v6e's 128 MiB; vmem_limit_bytes is raised to 48 MiB below.
    per_buffer_budget = 8 * 1024 * 1024
    max_rows = max(sub, per_buffer_budget // (lane_dim * itemsize))
    tile = min(rows, max_rows, 4096)

    # Keep the grid multi-step so both v7x TensorCores get work (and per-step
    # pipeline overhead stays amortized without collapsing the grid to 1).
    if rows > 8 * sub:
        tile = min(tile, pl.cdiv(rows, 8))

    tile = max(sub, (tile // sub) * sub)
    return tile


def rms_norm(x: jax.Array, weight: jax.Array, eps: float = 1e-6,
             block_rows: int | None = None) -> jax.Array:
    """RMSNorm over the last axis of x with per-feature scale `weight`."""
    dim = x.shape[-1]
    assert weight.shape == (dim,)

    orig_shape = x.shape
    rows = math.prod(orig_shape[:-1]) if len(orig_shape) > 1 else 1
    x2d = x.reshape(rows, dim)
    itemsize = jnp.dtype(x.dtype).itemsize

    # Lane packing for small hidden dims: present a 128-lane-dense slab.
    pack = 1
    lane_dim = dim
    if dim < 128 and (128 % dim == 0):
        p = 128 // dim
        if rows % p == 0 and rows >= p:
            pack = p
            lane_dim = pack * dim                      # == 128
            rows = rows // pack
            x2d = x2d.reshape(rows, lane_dim)

    if pack > 1:
        w_in = jnp.tile(weight, pack).reshape(1, lane_dim)
    else:
        w_in = weight.reshape(1, dim)

    if block_rows is not None:
        tile_rows = max(1, min(block_rows, rows))
    else:
        tile_rows = _choose_tile_rows(rows, lane_dim, itemsize)
    grid = (pl.cdiv(rows, tile_rows),)                 # boundary block is masked

    x_spec = pl.BlockSpec((tile_rows, lane_dim), lambda i: (i, 0))
    w_spec = pl.BlockSpec((1, lane_dim), lambda i: (0, 0))
    o_spec = pl.BlockSpec((tile_rows, lane_dim), lambda i: (i, 0))

    compiler_params = pltpu.CompilerParams(
        dimension_semantics=("parallel",),
        vmem_limit_bytes=48 * 1024 * 1024,
    )

    if pack > 1:
        # Block-diagonal ones matrix: seg[i, j] = 1 iff lanes i, j belong to the
        # same logical row segment. DMA'd once (constant block index).
        lane_ids = jnp.arange(lane_dim) // dim
        seg = (lane_ids[:, None] == lane_ids[None, :]).astype(jnp.float32)
        kernel = functools.partial(_rmsnorm_packed_kernel,
                                   inv_dim=1.0 / dim, eps=eps)
        in_specs = [x_spec, w_spec,
                    pl.BlockSpec((lane_dim, lane_dim), lambda i: (0, 0))]
        args = (x2d, w_in, seg)
    else:
        kernel = functools.partial(_rmsnorm_kernel, eps=eps)
        in_specs = [x_spec, w_spec]
        args = (x2d, w_in)

    out2d = pl.pallas_call(
        kernel,
        out_shape=jax.ShapeDtypeStruct((rows, lane_dim), x.dtype),
        grid_spec=pltpu.PrefetchScalarGridSpec(
            num_scalar_prefetch=0,
            grid=grid,
            in_specs=in_specs,
            out_specs=o_spec,
        ),
        compiler_params=compiler_params,
    )(*args)

    return out2d.reshape(orig_shape)


# ---------------------------------------------------------------------------
# Demo / self-test
# ---------------------------------------------------------------------------

def _reference(x, weight, eps):
    return x * jax.lax.rsqrt(
        jnp.mean(x * x, axis=-1, keepdims=True) + eps) * weight


if __name__ == "__main__":
    eps = 1e-6
    key = jax.random.PRNGKey(0)

    # Module config: RMSNorm(dim=32); input (batch=2, seq=8, hidden=32).
    # dim=32 < 128 exercises the lane-packed path.
    dim = 32
    batch, seq = 2, 8
    x = jax.random.normal(key, (batch, seq, dim), dtype=jnp.float32)
    weight = jnp.ones((dim,), dtype=jnp.float32)       # nn.Parameter(torch.ones(dim))

    out = jax.block_until_ready(rms_norm(x, weight, eps=eps))
    ref = _reference(x, weight, eps)
    assert out.shape == x.shape and out.dtype == x.dtype
    assert jnp.max(jnp.abs(out - ref)) < 1e-4

    # Standard (dim >= 128) path with a multi-step grid and evenly-dividing rows.
    k1, k2 = jax.random.split(jax.random.PRNGKey(1))
    x2 = jax.random.normal(k1, (4, 64, 256), dtype=jnp.float32)
    w2 = 1.0 + 0.1 * jax.random.normal(k2, (256,), dtype=jnp.float32)
    out2 = jax.block_until_ready(rms_norm(x2, w2, eps=eps))
    assert jnp.max(jnp.abs(out2 - _reference(x2, w2, eps))) < 1e-4

    # Non-divisible row count: exercised via the cdiv grid + masked boundary block.
    x3 = jax.random.normal(jax.random.PRNGKey(2), (3, 50, 256), dtype=jnp.float32)
    out3 = jax.block_until_ready(rms_norm(x3, w2, eps=eps))
    assert jnp.max(jnp.abs(out3 - _reference(x3, w2, eps))) < 1e-4

    print("KERNEL_OK")
</pallas_src>

<mosaic_0001>
module attributes {stable_mosaic.version = 11 : i64} {
  func.func @_rmsnorm_packed_kernel(%arg0: i32, %arg1: memref<4x128xf32, #tpu.memory_space<vmem>>, %arg2: memref<1x128xf32, #tpu.memory_space<vmem>>, %arg3: memref<128x128xf32, #tpu.memory_space<vmem>>, %arg4: memref<4x128xf32, #tpu.memory_space<vmem>>) attributes {dimension_semantics = [#tpu.dimension_semantics<parallel>], iteration_bounds = array<i64: 1>, scalar_prefetch = 0 : i64, scratch_operands = 0 : i64, tpu.core_type = #tpu.core_type<tc>, window_params = [{transform_indices = @transform_0, window_bounds = array<i64: 4, 128>}, {pipeline_mode = #tpu.pipeline_mode<synchronous>, transform_indices = @transform_1, window_bounds = array<i64: 1, 128>}, {pipeline_mode = #tpu.pipeline_mode<synchronous>, transform_indices = @transform_2, window_bounds = array<i64: 128, 128>}, {transform_indices = @transform_3, window_bounds = array<i64: 4, 128>}]} {
    %c0 = arith.constant 0 : index
    %c0_0 = arith.constant 0 : index
    %0 = vector.load %arg1[%c0, %c0_0] : memref<4x128xf32, #tpu.memory_space<vmem>>, vector<4x128xf32>
    %c0_1 = arith.constant 0 : index
    %c0_2 = arith.constant 0 : index
    %1 = vector.load %arg2[%c0_1, %c0_2] : memref<1x128xf32, #tpu.memory_space<vmem>>, vector<1x128xf32>
    %c0_3 = arith.constant 0 : index
    %c0_4 = arith.constant 0 : index
    %2 = vector.load %arg3[%c0_3, %c0_4] : memref<128x128xf32, #tpu.memory_space<vmem>>, vector<128x128xf32>
    %3 = arith.mulf %0, %0 : vector<4x128xf32>
    %cst = arith.constant dense<0.000000e+00> : vector<4x128xf32>
    %4 = tpu.matmul %3, %2, %cst {dimension_numbers = #tpu.dot_dimension_numbers<[1], [0], [0], [1], [0, 0, 1, 1], [], []>} : vector<4x128xf32>, vector<128x128xf32>, vector<4x128xf32> -> vector<4x128xf32>
    %cst_5 = arith.constant 3.125000e-02 : f32
    %5 = vector.broadcast %cst_5 : f32 to vector<4x128xf32>
    %6 = arith.mulf %4, %5 : vector<4x128xf32>
    %cst_6 = arith.constant 9.99999997E-7 : f32
    %7 = vector.broadcast %cst_6 : f32 to vector<4x128xf32>
    %8 = arith.addf %6, %7 : vector<4x128xf32>
    %9 = math.rsqrt %8 : vector<4x128xf32>
    %10 = arith.mulf %0, %9 : vector<4x128xf32>
    %11 = vector.broadcast %1 : vector<1x128xf32> to vector<4x128xf32>
    %12 = arith.mulf %10, %11 : vector<4x128xf32>
    %c0_7 = arith.constant 0 : index
    %c0_8 = arith.constant 0 : index
    %13 = vector.load %arg4[%c0_7, %c0_8] : memref<4x128xf32, #tpu.memory_space<vmem>>, vector<4x128xf32>
    tpu.vector_store %arg4[%c0_7, %c0_8], %12 {strides = array<i32>} : memref<4x128xf32, #tpu.memory_space<vmem>>, vector<4x128xf32>,
    return
  }
  func.func @transform_0(%arg0: i32) -> (i32, i32) {
    %c0_i32 = arith.constant 0 : i32
    %c0_i32_0 = arith.constant 0 : i32
    return %arg0, %c0_i32 : i32, i32
  }
  func.func @transform_1(%arg0: i32) -> (i32, i32) {
    %c0_i32 = arith.constant 0 : i32
    %c0_i32_0 = arith.constant 0 : i32
    %c0_i32_1 = arith.constant 0 : i32
    return %c0_i32, %c0_i32_0 : i32, i32
  }
  func.func @transform_2(%arg0: i32) -> (i32, i32) {
    %c0_i32 = arith.constant 0 : i32
    %c0_i32_0 = arith.constant 0 : i32
    %c0_i32_1 = arith.constant 0 : i32
    return %c0_i32, %c0_i32_0 : i32, i32
  }
  func.func @transform_3(%arg0: i32) -> (i32, i32) {
    %c0_i32 = arith.constant 0 : i32
    %c0_i32_0 = arith.constant 0 : i32
    return %arg0, %c0_i32 : i32, i32
  }
}

</mosaic_0001>

<bundles_post_ra>
// kernel: tpu_custom_call.1
= control target key start
LH: loop header
LB: loop body
LE: loop exit
PB: predicated region body
PF: predicated region fallthrough
CT: control target
= control target key end

     0   :  { %8 = vsyncpa [#allocation3], 0  ;;  %s282_s0 = inlined_call_operand.hbm [shape: f32[4,128], index: 0, kind: input, shape index: {}]   ;;  %s283_s1 = inlined_call_operand.hbm [shape: f32[1,128], index: 1, kind: input, shape index: {}]   ;;  %s284_s2 = inlined_call_operand.hbm [shape: f32[128,128], index: 2, kind: input, shape index: {}]   ;;  %s285_s3 = inlined_call_operand.hbm [shape: f32[4,128], index: 3, kind: output, shape index: {}]  }
   0x1   :  { %9 = vsyncpa [#allocation6], 0  ;;  %s27_s14 = sshll.u32 %s283_s1, 4  ;;  %s28_s14 = int_to_ptr.hbm [resolvable:$true] %s27_s14 }
   0x2   :  { %10 = vsyncpa [#allocation4], 0  ;;  %s244_s15 = smov [#allocation5]   ;;  %s16_s19 = sshll.u32 %s282_s0, 4  ;;  %s17_s19 = int_to_ptr.hbm [resolvable:$true] %s16_s19 }
   0x3   :  { %s29_s16 = sshll.u32 %s244_s15, 4  ;;  %s245_s20 = smov [#allocation2]   ;;  %s30_s16 = int_to_ptr.vmem [resolvable:$true] %s29_s16 }
   0x4   :  { %32 = dma.hbm_to_vmem [thread:$0]  %s28_s14, 16, %s30_s16, [#allocation6]  }
   0x5   :  { %s18_s21 = sshll.u32 %s245_s20, 4  ;;  %s37_s24 = sshll.u32 %s284_s2, 4  ;;  %s19_s21 = int_to_ptr.vmem [resolvable:$true] %s18_s21  ;;  %s38_s24 = int_to_ptr.hbm [resolvable:$true] %s37_s24 }
   0x6   :  { %21 = dma.hbm_to_vmem [thread:$0]  %s17_s19, 64, %s19_s21, [#allocation3]  }
   0x7   :  { %s246_s1 = smov [#allocation7]   ;;  %s247_s26 = smov 128  }
   0x8   :  { %s39_s25 = sshll.u32 %s246_s1, 4  ;;  %s248_s27 = smov 8   ;;  %s40_s25 = int_to_ptr.vmem [resolvable:$true] %s39_s25 }
   0x9   :  { %45 = dma.hbm_to_vmem [thread:$0]  %s38_s24, 2048, %s40_s25, [#allocation6], %s247_s26, %s247_s26, %s248_s27  }
   0xa   :  { %238 = dma.done.wait [#allocation3], 64  }
   0xb   :  { %239 = vsyncadd [#allocation3], 4294967232 }
   0xc   :  { %240 = dma.done.wait [#allocation6], 2064  }
   0xd   :  { %241 = vsyncadd [#allocation6], 4294965232  ;;  %v75_v0 = vld [vmem:[#allocation7 + $0x78] sm:$0xff]  ;;  %v74_v1 = vld [vmem:[#allocation7 + $0x70] sm:$0xff]  ;;  %s249_s0 = smov [#allocation8]   ;;  %s122_s30 = sshll.u32 %s285_s3, 4  ;;  %s123_s30 = int_to_ptr.hbm [resolvable:$true] %s122_s30 }
   0xe   :  { %77 = vmatpush.msra.mxu0 %v75_v0  ;;  %v73_v2 = vld [vmem:[#allocation7 + $0x68] sm:$0xff]  ;;  %v72_v3 = vld [vmem:[#allocation7 + $0x60] sm:$0xff]  ;;  %v71_v4 = vld [vmem:[#allocation7 + $0x58] sm:$0xff]  ;;  %s120_s2 = sshll.u32 %s249_s0, 4  ;;  %s121_s2 = int_to_ptr.vmem [resolvable:$true] %s120_s2 }
   0xf   :  { %v70_v5 = vld [vmem:[#allocation7 + $0x50] sm:$0xff]  ;;  %v69_v6 = vld [vmem:[#allocation7 + $0x48] sm:$0xff]  ;;  %v68_v7 = vld [vmem:[#allocation7 + $0x40] sm:$0xff] }
  0x10   :  { %78 = vmatpush.msra.mxu0 %v74_v1  ;;  %v67_v8 = vld [vmem:[#allocation7 + $0x38] sm:$0xff]  ;;  %v66_v9 = vld [vmem:[#allocation7 + $0x30] sm:$0xff]  ;;  %v65_v10 = vld [vmem:[#allocation7 + $0x28] sm:$0xff] }
  0x11   :  { %v64_v11 = vld [vmem:[#allocation7 + $0x20] sm:$0xff]  ;;  %v63_v12 = vld [vmem:[#allocation7 + $0x18] sm:$0xff]  ;;  %v62_v13 = vld [vmem:[#allocation7 + $0x10] sm:$0xff] }
  0x12   :  { %79 = vmatpush.msra.mxu0 %v73_v2  ;;  %v58_v14 = vld [vmem:[#allocation2] sm:$0xf]  ;;  %v61_v15 = vld [vmem:[#allocation7 + $0x8] sm:$0xff]  ;;  %v60_v16 = vld [vmem:[#allocation7] sm:$0xff] }
  0x13   :  { %v76_v17 = vmul.f32 %v58_v14, %v58_v14  ;;  %v139_v27 = vld [vmem:[#allocation5] ss:$0 sm:$0xff] }
  0x14   :  { %80 = vmatpush.msra.mxu0 %v72_v3 }
  0x16   :  { %81 = vmatpush.msra.mxu0 %v71_v4 }
  0x18   :  { %82 = vmatpush.msra.mxu0 %v70_v5 }
  0x1a   :  { %83 = vmatpush.msra.mxu0 %v69_v6 }
  0x1c   :  { %84 = vmatpush.msra.mxu0 %v68_v7 }
  0x1e   :  { %85 = vmatpush.msra.mxu0 %v67_v8 }
  0x20   :  { %86 = vmatpush.msra.mxu0 %v66_v9 }
  0x22   :  { %87 = vmatpush.msra.mxu0 %v65_v10 }
  0x24   :  { %88 = vmatpush.msra.mxu0 %v64_v11 }
  0x26   :  { %89 = vmatpush.msra.mxu0 %v63_v12 }
  0x28   :  { %90 = vmatpush.msra.mxu0 %v62_v13 }
  0x2a   :  { %91 = vmatpush.msra.mxu0 %v61_v15 }
  0x2c   :  { %92 = vmatpush.msra.mxu0 %v60_v16 }
  0x2d   :  { %93 = vmatmul.f32.vlgmr.msra.gmra.mxu0 %v76_v17 }
  0xaa   :  { %v94_v18 = vpop.f32.mrf.mxu0 }
  0xab   :  { %v97_v19 = vmul.f32 0.03125, %v94_v18 }
  0xad   :  { %v98_v20 = vadd.f32 1e-06, %v97_v19 }
  0xaf   :  { %140 = vrsqrt.f32 %v98_v20  ;;  %vm105_vm1 = vweird.f32 %v98_v20 }
  0xb5   :  { %v141_v21 = vpop.eup %140 }
  0xb6   :  { %v100_v22 = vmul.f32 %v141_v21, %v98_v20  ;;  %vm106_vm0 = vweird.f32 %v141_v21 }
  0xb7   :  { %vm107_vm2 = vmor %vm105_vm1, %vm106_vm0 }
  0xb8   :  { %v101_v23 = vmul.f32 %v141_v21, %v100_v22 }
  0xba   :  { %v102_v24 = vmul.f32 0.5, %v101_v23 }
  0xbc   :  { %v103_v25 = vsub.f32 1.5, %v102_v24 }
  0xbe   :  { %v104_v26 = vmul.f32 %v141_v21, %v103_v25 }
  0xc0   :  { %v108_v28 = vsel %vm107_vm2, %v141_v21, %v104_v26 }
  0xc1   :  { %v109_v29 = vmul.f32 %v108_v28, %v58_v14 }
  0xc3   :  { %v113_v30 = vmul.f32 %v139_v27, %v109_v29 }
  0xc5   :  { %114 = vst [vmem:[#allocation8] sm:$0xf] %v113_v30 }
  0xc6   :  { %125 = dma.vmem_to_hbm [thread:$0]  %s121_s2, 64, %s123_s30, [#allocation4]  }
  0xc7   :  { %242 = dma.done.wait [#allocation4], 64  }
  0xc8   :  { %243 = vsyncadd [#allocation4], 4294967232 }
  0xc9   :  { %130 = vsyncpa [#allocation3], 1 }
  0xca   :  { %131 = vsyncpa [#allocation6], 1 }
  0xcb   :  { %132 = vsyncpa [#allocation4], 1 }

</bundles_post_ra>
